<compile_context>
chip_gen: v7x
topology: tpu7x:2x2x1
jax: 0.10.0
libtpu: 0.0.40
codegen_flags: <defaults>
</compile_context>

<pallas_src>
import functools
import math

import jax
import jax.numpy as jnp
import numpy as np
from jax.experimental import pallas as pl
from jax.experimental.pallas import tpu as pltpu


# -----------------------------------------------------------------------------
# Glue helpers (external to the module in the original code).
# TODO(synk): quantAB / rgb2lab are external helpers not given in the module;
#             standard sRGB->CIELAB and uniform AB-grid definitions are assumed.
# -----------------------------------------------------------------------------
def rgb2lab(rgb):
    """rgb: (B, 3, H, W) float32 in [0, 1] -> LAB (B, 3, H, W)."""
    r, g, b = rgb[:, 0], rgb[:, 1], rgb[:, 2]

    def srgb_to_linear(c):
        return jnp.where(c > 0.04045, ((c + 0.055) / 1.055) ** 2.4, c / 12.92)

    r, g, b = srgb_to_linear(r), srgb_to_linear(g), srgb_to_linear(b)
    x = 0.412453 * r + 0.357580 * g + 0.180423 * b
    y = 0.212671 * r + 0.715160 * g + 0.072169 * b
    z = 0.019334 * r + 0.119193 * g + 0.950227 * b
    x = x / 0.95047
    z = z / 1.08883

    def f(t):
        return jnp.where(t > 0.008856, jnp.cbrt(t), 7.787 * t + 16.0 / 116.0)

    fx, fy, fz = f(x), f(y), f(z)
    L = 116.0 * fy - 16.0
    a = 500.0 * (fx - fy)
    bb = 200.0 * (fy - fz)
    return jnp.stack([L, a, bb], axis=1)


def quantAB(levels, vmin, vmax):
    """Uniform (levels x levels) grid over the AB plane -> two (K,) vectors."""
    vals = jnp.linspace(float(vmin), float(vmax), levels, dtype=jnp.float32)
    A, B = jnp.meshgrid(vals, vals, indexing="ij")
    return A.reshape(-1), B.reshape(-1)


def _pick_tile(n, want):
    """Largest multiple of 128 that is <= want and divides n."""
    t = max(128, (min(want, n) // 128) * 128)
    while t >= 128:
        if n % t == 0:
            return t
        t -= 128
    return n


_LOG_PMIN = math.log(0.001)
_LOG_PMAX = math.log(0.999)
_NEG_PAD = -1e9  # padded bin rows -> logits ~ -1e9 -> exp underflows to 0


def _build_weights(levels, vmin, vmax, alpha, kp):
    """Build the two (kp, 8) logit-projection matrices (img / gt branches).

    x rows are [L_img, L_gt, a_img, b_img, a_gt, b_gt, ones, zeros], so
    logits = W @ x gives the shift-invariant form of -alpha*dist per bin.
    """
    K = levels * levels
    ta, tb = quantAB(levels, vmin, vmax)                   # (K,)
    col_a = (2.0 * alpha) * ta
    col_b = (2.0 * alpha) * tb
    bias = (-alpha) * (ta * ta + tb * tb)
    pad = kp - K

    def padded(v, fill):
        return jnp.concatenate(
            [v.astype(jnp.float32), jnp.full((pad,), fill, jnp.float32)])

    z = jnp.zeros((kp,), jnp.float32)
    col_a_p = padded(col_a, 0.0)
    col_b_p = padded(col_b, 0.0)
    bias_p = padded(bias, _NEG_PAD)
    wp = jnp.stack([z, z, col_a_p, col_b_p, z, z, bias_p, z], axis=1)  # (kp, 8)
    wq = jnp.stack([z, z, z, z, col_a_p, col_b_p, bias_p, z], axis=1)  # (kp, 8)
    return wp, wq


# -----------------------------------------------------------------------------
# Pallas kernel: one pixel tile per grid step, lane-chunked compute, MXU logits.
#   out[i, 0] = sum_tile |L_img - L_gt|
#   out[i, 1] = sum_tile sum_bins -(q * clipped_log_p)
# -----------------------------------------------------------------------------
def _lab_loss_kernel(x_ref, wp_ref, wq_ref, out_ref, *, chunk):
    tn = x_ref.shape[1]
    n_chunks = tn // chunk

    # L1 over the L channel for this tile (rows 0 and 1) -- cheap, done once.
    li = x_ref[pl.ds(0, 1), :]
    lg = x_ref[pl.ds(1, 1), :]
    l1 = jnp.sum(jnp.abs(li - lg))

    def body(c, ce_acc):
        off = pl.multiple_of(c * chunk, chunk)
        x = x_ref[:, pl.ds(off, chunk)]                     # (8, chunk)

        # p branch (img): shifted logits on the MXU, then clipped log-softmax.
        # f32 contract precision is required (logit magnitudes ~2.5e4).
        lp = jnp.dot(wp_ref[...], x,
                     preferred_element_type=jnp.float32,
                     precision=jax.lax.Precision.HIGHEST)   # (Kp, chunk)
        m_p = jnp.max(lp, axis=0, keepdims=True)
        s_p = jnp.sum(jnp.exp(lp - m_p), axis=0, keepdims=True)
        log_p = jnp.clip(lp - (m_p + jnp.log(s_p)), _LOG_PMIN, _LOG_PMAX)

        # q branch (gt): unnormalised softmax; the normalisation is folded in
        # after the bin reduction so q itself is never materialised.
        lq = jnp.dot(wq_ref[...], x,
                     preferred_element_type=jnp.float32,
                     precision=jax.lax.Precision.HIGHEST)   # (Kp, chunk)
        m_q = jnp.max(lq, axis=0, keepdims=True)
        e_q = jnp.exp(lq - m_q)
        s_q = jnp.sum(e_q, axis=0, keepdims=True)
        t = jnp.sum(e_q * log_p, axis=0, keepdims=True)     # (1, chunk)
        return ce_acc - t * pl.reciprocal(s_q, approx=True)

    ce_acc = jax.lax.fori_loop(
        0, n_chunks, body, jnp.zeros((1, chunk), jnp.float32))
    ce = jnp.sum(ce_acc)

    # Lane-dense per-block partials: lane 0 = L1 partial, lane 1 = CE partial.
    lane = jax.lax.broadcasted_iota(jnp.int32, (1, 128), 1)
    out_ref[...] = jnp.where(lane == 0, l1,
                             jnp.where(lane == 1, ce, jnp.float32(0.0)))


def lab_loss_pallas(img, gt, *, alpha=1.0, weight=1.0, levels=7,
                    vmin=-80.0, vmax=80.0, tile_n=2048, chunk=128):
    """img, gt: (B, 3, H, W) float32 RGB in [0, 1]. Returns scalar loss."""
    B, C, H, W = img.shape
    assert C == 3
    N = B * H * W
    # TODO(synk): pad/mask the pixel axis when B*H*W is not a multiple of 128.
    assert N % 128 == 0, "B*H*W must be a multiple of 128"
    # NOTE(v7x): keep tile_n small enough that N // tn >= 2 so the single
    # "parallel" grid axis can shard across the two TensorCores.
    tn = _pick_tile(N, tile_n)
    if chunk > tn or tn % chunk != 0:
        chunk = 128
    num_tiles = N // tn

    lab_img = jnp.clip(rgb2lab(img), vmin, vmax)
    lab_gt = jnp.clip(rgb2lab(gt), vmin, vmax)

    # Flatten batch into the pixel axis; stack 8 rows (6 LAB planes + ones for
    # the bias column of the MXU projection + a zero pad row) -> one (8, tn)
    # DMA per grid step with full lane/sublane occupancy.
    ones = jnp.ones((N,), jnp.float32)
    zeros = jnp.zeros((N,), jnp.float32)
    planes = jnp.stack(
        [
            lab_img[:, 0].reshape(N),  # 0: L img
            lab_gt[:, 0].reshape(N),   # 1: L gt
            lab_img[:, 1].reshape(N),  # 2: a img
            lab_img[:, 2].reshape(N),  # 3: b img
            lab_gt[:, 1].reshape(N),   # 4: a gt
            lab_gt[:, 2].reshape(N),   # 5: b gt
            ones,                      # 6: bias lane
            zeros,                     # 7: pad
        ],
        axis=0,
    ).astype(jnp.float32)              # (8, N)

    K = levels * levels
    kp = ((K + 7) // 8) * 8            # pad bins to a sublane multiple
    wp, wq = _build_weights(int(levels), float(vmin), float(vmax),
                            float(alpha), kp)

    partials = pl.pallas_call(
        functools.partial(_lab_loss_kernel, chunk=int(chunk)),
        out_shape=jax.ShapeDtypeStruct((num_tiles, 128), jnp.float32),
        grid_spec=pltpu.PrefetchScalarGridSpec(
            num_scalar_prefetch=0,
            grid=(num_tiles,),
            in_specs=[
                pl.BlockSpec((8, tn), lambda i: (0, i)),     # pixel tile
                pl.BlockSpec((kp, 8), lambda i: (0, 0)),     # resident W (img)
                pl.BlockSpec((kp, 8), lambda i: (0, 0)),     # resident W (gt)
            ],
            out_specs=pl.BlockSpec((1, 128), lambda i: (i, 0)),
        ),
        compiler_params=pltpu.CompilerParams(
            dimension_semantics=("parallel",)),
    )(planes, wp, wq)

    sums = jnp.sum(partials, axis=0)     # (128,), lanes >= 2 are zero
    loss_l = sums[0] / N                 # mean |L_img - L_gt| over (B, H, W)
    loss_ab = sums[1] / B                # sum over (bins, H, W), mean over batch
    return loss_l + weight * loss_ab


# -----------------------------------------------------------------------------
# Pure-JAX reference (mirrors the PyTorch forward semantics) for validation.
# -----------------------------------------------------------------------------
def lab_loss_reference(img, gt, *, alpha=1.0, weight=1.0, levels=7,
                       vmin=-80.0, vmax=80.0):
    lab_img = jnp.clip(rgb2lab(img), vmin, vmax)
    lab_gt = jnp.clip(rgb2lab(gt), vmin, vmax)
    loss_l = jnp.mean(jnp.abs(lab_img[:, 0] - lab_gt[:, 0]))

    tab_a, tab_b = quantAB(levels, vmin, vmax)
    tab_a = tab_a[None, :, None, None]
    tab_b = tab_b[None, :, None, None]

    def hist2dist_ab(ab):
        dist = (ab[:, 1:2] - tab_a) ** 2 + (ab[:, 2:3] - tab_b) ** 2
        return jax.nn.softmax(-alpha * dist, axis=1)

    p = jnp.clip(hist2dist_ab(lab_img), 0.001, 0.999)
    q = hist2dist_ab(lab_gt)
    loss_ab = jnp.mean(jnp.sum(-(q * jnp.log(p)), axis=(1, 2, 3)))
    return loss_l + weight * loss_ab


if __name__ == "__main__":
    key = jax.random.PRNGKey(0)
    k1, k2 = jax.random.split(key)
    B, C, H, W = 2, 3, 16, 16
    img = jax.random.uniform(k1, (B, C, H, W), dtype=jnp.float32)
    gt = jax.random.uniform(k2, (B, C, H, W), dtype=jnp.float32)

    loss = jax.block_until_ready(lab_loss_pallas(img, gt))
    ref = jax.block_until_ready(lab_loss_reference(img, gt))

    assert np.isfinite(float(loss))
    np.testing.assert_allclose(float(loss), float(ref), rtol=5e-3, atol=1e-2)

    print("KERNEL_OK")
</pallas_src>

<mosaic_0001>
module attributes {stable_mosaic.version = 11 : i64} {
  func.func @_lab_loss_kernel(%arg0: i32, %arg1: memref<8x512xf32, #tpu.memory_space<vmem>>, %arg2: memref<56x8xf32, #tpu.memory_space<vmem>>, %arg3: memref<56x8xf32, #tpu.memory_space<vmem>>, %arg4: memref<1x128xf32, #tpu.memory_space<vmem>>) attributes {dimension_semantics = [#tpu.dimension_semantics<parallel>], iteration_bounds = array<i64: 1>, scalar_prefetch = 0 : i64, scratch_operands = 0 : i64, tpu.core_type = #tpu.core_type<tc>, window_params = [{transform_indices = @transform_0, window_bounds = array<i64: 8, 512>}, {pipeline_mode = #tpu.pipeline_mode<synchronous>, transform_indices = @transform_1, window_bounds = array<i64: 56, 8>}, {pipeline_mode = #tpu.pipeline_mode<synchronous>, transform_indices = @transform_2, window_bounds = array<i64: 56, 8>}, {transform_indices = @transform_3, window_bounds = array<i64: 1, 128>}]} {
    %c0 = arith.constant 0 : index
    %c0_0 = arith.constant 0 : index
    %0 = vector.load %arg1[%c0, %c0_0] : memref<8x512xf32, #tpu.memory_space<vmem>>, vector<1x512xf32>
    %c1 = arith.constant 1 : index
    %c0_1 = arith.constant 0 : index
    %1 = vector.load %arg1[%c1, %c0_1] : memref<8x512xf32, #tpu.memory_space<vmem>>, vector<1x512xf32>
    %2 = arith.subf %0, %1 : vector<1x512xf32>
    %3 = math.absf %2 : vector<1x512xf32>
    %4 = vector.shape_cast %3 : vector<1x512xf32> to vector<1x1x512xf32>
    %cst = arith.constant dense<0.000000e+00> : vector<1xf32>
    %5 = vector.multi_reduction <add>, %4, %cst [1, 2] : vector<1x1x512xf32> to vector<1xf32>
    %6 = vector.shape_cast %5 : vector<1xf32> to vector<1x1x1xf32>
    %7 = vector.extract %6[0, 0, 0] : f32 from vector<1x1x1xf32>
    %cst_2 = arith.constant 0.000000e+00 : f32
    %8 = vector.broadcast %cst_2 : f32 to vector<1x128xf32>
    %c0_i32 = arith.constant 0 : i32
    %c4_i32 = arith.constant 4 : i32
    %9 = arith.addi %c0_i32, %c4_i32 : i32
    %c1_i32 = arith.constant 1 : i32
    %10 = scf.for %arg5 = %c0_i32 to %9 step %c1_i32 iter_args(%arg6 = %8) -> (vector<1x128xf32>)  : i32 {
      %c128_i32 = arith.constant 128 : i32
      %26 = arith.muli %arg5, %c128_i32 : i32
      %27 = tpu.assume_multiple %26, 128 : i32
      %c0_10 = arith.constant 0 : index
      %28 = arith.index_cast %27 : i32 to index
      %29 = vector.load %arg1[%c0_10, %28] : memref<8x512xf32, #tpu.memory_space<vmem>>, vector<8x128xf32>
      %c0_11 = arith.constant 0 : index
      %c0_12 = arith.constant 0 : index
      %30 = vector.load %arg2[%c0_11, %c0_12] : memref<56x8xf32, #tpu.memory_space<vmem>>, vector<56x8xf32>
      %cst_13 = arith.constant dense<0.000000e+00> : vector<56x128xf32>
      %31 = tpu.matmul %30, %29, %cst_13 {dimension_numbers = #tpu.dot_dimension_numbers<[1], [0], [0], [1], [0, 0, 1, 1], [], []>, precision = #tpu.contract_precision<fp32>} : vector<56x8xf32>, vector<8x128xf32>, vector<56x128xf32> -> vector<56x128xf32>
      %cst_14 = arith.constant dense<0xFF800000> : vector<128xf32>
      %32 = vector.multi_reduction <maximumf>, %31, %cst_14 [0] : vector<56x128xf32> to vector<128xf32>
      %33 = vector.shape_cast %32 : vector<128xf32> to vector<1x128xf32>
      %34 = vector.broadcast %33 : vector<1x128xf32> to vector<56x128xf32>
      %35 = arith.subf %31, %34 : vector<56x128xf32>
      %36 = math.exp %35 : vector<56x128xf32>
      %cst_15 = arith.constant dense<0.000000e+00> : vector<128xf32>
      %37 = vector.multi_reduction <add>, %36, %cst_15 [0] : vector<56x128xf32> to vector<128xf32>
      %38 = vector.shape_cast %37 : vector<128xf32> to vector<1x128xf32>
      %39 = math.log %38 : vector<1x128xf32>
      %40 = arith.addf %33, %39 : vector<1x128xf32>
      %41 = vector.broadcast %40 : vector<1x128xf32> to vector<56x128xf32>
      %42 = arith.subf %31, %41 : vector<56x128xf32>
      %cst_16 = arith.constant -6.90775537 : f32
      %cst_17 = arith.constant -0.00100050028 : f32
      %43 = vector.broadcast %cst_16 : f32 to vector<56x128xf32>
      %44 = arith.maximumf %43, %42 : vector<56x128xf32>
      %45 = vector.broadcast %cst_17 : f32 to vector<56x128xf32>
      %46 = arith.minimumf %45, %44 : vector<56x128xf32>
      %c0_18 = arith.constant 0 : index
      %c0_19 = arith.constant 0 : index
      %47 = vector.load %arg3[%c0_18, %c0_19] : memref<56x8xf32, #tpu.memory_space<vmem>>, vector<56x8xf32>
      %cst_20 = arith.constant dense<0.000000e+00> : vector<56x128xf32>
      %48 = tpu.matmul %47, %29, %cst_20 {dimension_numbers = #tpu.dot_dimension_numbers<[1], [0], [0], [1], [0, 0, 1, 1], [], []>, precision = #tpu.contract_precision<fp32>} : vector<56x8xf32>, vector<8x128xf32>, vector<56x128xf32> -> vector<56x128xf32>
      %cst_21 = arith.constant dense<0xFF800000> : vector<128xf32>
      %49 = vector.multi_reduction <maximumf>, %48, %cst_21 [0] : vector<56x128xf32> to vector<128xf32>
      %50 = vector.shape_cast %49 : vector<128xf32> to vector<1x128xf32>
      %51 = vector.broadcast %50 : vector<1x128xf32> to vector<56x128xf32>
      %52 = arith.subf %48, %51 : vector<56x128xf32>
      %53 = math.exp %52 : vector<56x128xf32>
      %cst_22 = arith.constant dense<0.000000e+00> : vector<128xf32>
      %54 = vector.multi_reduction <add>, %53, %cst_22 [0] : vector<56x128xf32> to vector<128xf32>
      %55 = vector.shape_cast %54 : vector<128xf32> to vector<1x128xf32>
      %56 = arith.mulf %53, %46 : vector<56x128xf32>
      %cst_23 = arith.constant dense<0.000000e+00> : vector<128xf32>
      %57 = vector.multi_reduction <add>, %56, %cst_23 [0] : vector<56x128xf32> to vector<128xf32>
      %58 = vector.shape_cast %57 : vector<128xf32> to vector<1x128xf32>
      %59 = tpu.reciprocal %55 {approx = true} : vector<1x128xf32> -> vector<1x128xf32>
      %60 = arith.mulf %58, %59 : vector<1x128xf32>
      %61 = arith.subf %arg6, %60 : vector<1x128xf32>
      scf.yield %61 : vector<1x128xf32>
    }
    %c4_i32_3 = arith.constant 4 : i32
    %11 = vector.shape_cast %10 : vector<1x128xf32> to vector<1x1x128xf32>
    %cst_4 = arith.constant dense<0.000000e+00> : vector<1xf32>
    %12 = vector.multi_reduction <add>, %11, %cst_4 [1, 2] : vector<1x1x128xf32> to vector<1xf32>
    %13 = vector.shape_cast %12 : vector<1xf32> to vector<1x1x1xf32>
    %14 = vector.extract %13[0, 0, 0] : f32 from vector<1x1x1xf32>
    %15 = tpu.iota {dimensions = array<i32: 1>} : vector<1x128xi32>
    %c0_i32_5 = arith.constant 0 : i32
    %16 = vector.broadcast %c0_i32_5 : i32 to vector<1x128xi32>
    %17 = arith.cmpi eq, %15, %16 : vector<1x128xi32>
    %c1_i32_6 = arith.constant 1 : i32
    %18 = vector.broadcast %c1_i32_6 : i32 to vector<1x128xi32>
    %19 = arith.cmpi eq, %15, %18 : vector<1x128xi32>
    %cst_7 = arith.constant 0.000000e+00 : f32
    %20 = vector.broadcast %14 : f32 to vector<1x128xf32>
    %21 = vector.broadcast %cst_7 : f32 to vector<1x128xf32>
    %22 = arith.select %19, %20, %21 : vector<1x128xi1>, vector<1x128xf32>
    %23 = vector.broadcast %7 : f32 to vector<1x128xf32>
    %24 = arith.select %17, %23, %22 : vector<1x128xi1>, vector<1x128xf32>
    %c0_8 = arith.constant 0 : index
    %c0_9 = arith.constant 0 : index
    %25 = vector.load %arg4[%c0_8, %c0_9] : memref<1x128xf32, #tpu.memory_space<vmem>>, vector<1x128xf32>
    tpu.vector_store %arg4[%c0_8, %c0_9], %24 {strides = array<i32>} : memref<1x128xf32, #tpu.memory_space<vmem>>, vector<1x128xf32>,
    return
  }
  func.func @transform_0(%arg0: i32) -> (i32, i32) {
    %c0_i32 = arith.constant 0 : i32
    %c0_i32_0 = arith.constant 0 : i32
    return %c0_i32, %arg0 : i32, i32
  }
  func.func @transform_1(%arg0: i32) -> (i32, i32) {
    %c0_i32 = arith.constant 0 : i32
    %c0_i32_0 = arith.constant 0 : i32
    %c0_i32_1 = arith.constant 0 : i32
    return %c0_i32, %c0_i32_0 : i32, i32
  }
  func.func @transform_2(%arg0: i32) -> (i32, i32) {
    %c0_i32 = arith.constant 0 : i32
    %c0_i32_0 = arith.constant 0 : i32
    %c0_i32_1 = arith.constant 0 : i32
    return %c0_i32, %c0_i32_0 : i32, i32
  }
  func.func @transform_3(%arg0: i32) -> (i32, i32) {
    %c0_i32 = arith.constant 0 : i32
    %c0_i32_0 = arith.constant 0 : i32
    return %arg0, %c0_i32 : i32, i32
  }
}

</mosaic_0001>

<bundles_post_ra>
// kernel: tpu_custom_call.1
= control target key start
LH: loop header
LB: loop body
LE: loop exit
PB: predicated region body
PF: predicated region fallthrough
CT: control target
= control target key end

     0   :  { %8 = vsyncpa [#allocation3], 0  ;;  %v21_v1 = vlaneseq  ;;  %vm41_vm0 = vcmask 1040384   ;;  %v2361_v28 = vmov 0.0   ;;  %s2363_s17 = smov 0   ;;  %s2935_s0 = inlined_call_operand.vmem [shape: f32[8,512], index: 0, kind: input, shape index: {}]   ;;  %s2936_s1 = inlined_call_operand.vmem [shape: f32[56,8], index: 1, kind: input, shape index: {}]   ;;  %s2937_s2 = inlined_call_operand.vmem [shape: f32[56,8], index: 2, kind: input, shape index: {}]   ;;  %s2938_s3 = inlined_call_operand.hbm [shape: f32[1,128], index: 3, kind: output, shape index: {}]  }
   0x1   :  { %v15_v0 = vld [vmem:[%s2935_s0] ss:$8 sm:$0xf]  ;;  %v1715_v2 = vld [vmem:[%s2935_s0 + $0x1] ss:$8 sm:$0xf] }
   0x2   :  { %v18_v3 = vsub.f32 %v15_v0, %v1715_v2  ;;  %v22_v4 = vshrl.u32 %v21_v1, 7 }
   0x4   :  { %v19_v5 = vand.u32 2147483647, %v18_v3  ;;  %v23_v6 = vsub.s32 0, %v22_v4  ;;  %v27_v7 = vsub.s32 1, %v22_v4  ;;  %v31_v8 = vsub.s32 2, %v22_v4 }
   0x5   :  { %v35_v9 = vsub.s32 3, %v22_v4 }
   0x6   :  { %v24_v10 = vrot.slane %v19_v5, %v23_v6  ;;  %v28_v11 = vrot.slane %v19_v5, %v27_v7  ;;  %v32_v12 = vrot.slane %v19_v5, %v31_v8 }
   0x7   :  { %v36_v13 = vrot.slane %v19_v5, %v35_v9 }
   0x8   :  { %v42_v14 = vsel %vm41_vm0, %v24_v10, 0.0  ;;  %v43_v15 = vsel %vm41_vm0, %v28_v11, 0.0  ;;  %v45_v16 = vsel %vm41_vm0, %v32_v12, 0.0 }
   0x9   :  { %v44_v17 = vadd.f32 %v43_v15, %v42_v14  ;;  %v47_v18 = vsel %vm41_vm0, %v36_v13, 0.0 }
   0xb   :  { %v46_v19 = vadd.f32 %v45_v16, %v44_v17 }
   0xd   :  { %v48_v20 = vadd.f32 %v47_v18, %v46_v19 }
   0xf   :  { %49 = vadd.xlane.f32.xlu0 %v48_v20 }
  0x9c   :  { %v50_v21 = vpop.xlane.xlu0 %49 }
  0x9d   :  { %v51_v22 = vrot.slane %v50_v21, 4 }
  0x9f   :  { %v52_v23 = vadd.f32 %v51_v22, %v50_v21 }
  0xa1   :  { %v53_v24 = vrot.slane %v52_v23, 2 }
  0xa3   :  { %v54_v25 = vadd.f32 %v53_v24, %v52_v23 }
  0xa5   :  { %v55_v26 = vrot.slane %v54_v25, 1 }
  0xa7   :  { %v56_v27 = vadd.f32 %v55_v26, %v54_v25 }
  0xa9   :  { %2230 = vpush %v56_v27 }
  0xda   :  { %s2359_s16 = spop %2230 }
  0xdb LB: > { %v71_v29 = vld [vmem:[%s2936_s1] sm:$0xff]  ;;  %vm78_vm1 = vcmask 64512   ;;  %v72_v31 = vld [vmem:[%s2936_s1 + $0x8] sm:$0xff]  ;;  %v2325_v32 = vmov 0.0   ;;  %v73_v37 = vld [vmem:[%s2936_s1 + $0x10] sm:$0xff]  ;;  %s1716_s30 = sshll.u32 %s2323_s17, 7  ;;  %s2323_s17 = sphi %s2363_s17, %s63_s17   ;;  %v2319_v28 = vphi %v2361_v28, %v2939_v28  }
  0xdc   : > { %v873_v30 = vld [vmem:[%s2937_s2] sm:$0xff]  ;;  %1814 = vmatprep.subr.mxu0 %v2325_v32  ;;  %1952 = vmatprep.subr.mxu1 %v2325_v32  ;;  %v80_v33 = vsel %vm78_vm1, %v71_v29, 0  ;;  %v83_v35 = vsel %vm78_vm1, %v72_v31, 0  ;;  %v874_v36 = vld [vmem:[%s2937_s2 + $0x8] sm:$0xff]  ;;  %v875_v38 = vld [vmem:[%s2937_s2 + $0x10] sm:$0xff]  ;;  %vm2326_vm2 = vmmov 0  }
  0xdd   : > { %v881_v34 = vsel %vm78_vm1, %v873_v30, 0  ;;  %1816 = vmatprep.mubr.msk.f32.mxu0 %vm2326_vm2, %v2325_v32  ;;  %1954 = vmatprep.mubr.msk.f32.mxu1 %vm2326_vm2, %v2325_v32  ;;  %v2399_v39 = vand.u32 4294901760, %v80_v33  ;;  %v2403_v41 = vand.u32 4294901760, %v83_v35  ;;  %v884_v42 = vsel %vm78_vm1, %v874_v36, 0  ;;  %v74_v43 = vld [vmem:[%s2936_s1 + $0x18] sm:$0xff]  ;;  %s66_s6 = sshra.s32 %s1716_s30, 7 }
  0xde   : > { %v2401_v40 = vand.u32 4294901760, %v881_v34  ;;  %v2409_v44 = vand.u32 4294901760, %v884_v42  ;;  %v86_v45 = vsel %vm78_vm1, %v73_v37, 0  ;;  %v887_v46 = vsel %vm78_vm1, %v875_v38, 0  ;;  %v876_v48 = vld [vmem:[%s2937_s2 + $0x18] sm:$0xff]  ;;  %s1717_s9 = sshll.u32 %s66_s6, 3 }
  0xdf   : > { %v89_v47 = vsel %vm78_vm1, %v74_v43, 0  ;;  %v2418_v49 = vsub.f32 %v80_v33, %v2399_v39  ;;  %v2424_v51 = vsub.f32 %v83_v35, %v2403_v41  ;;  %v2426_v52 = vand.u32 4294901760, %v86_v45  ;;  %s69_s12 = scalar_lea.vmem %s2935_s0, %s1717_s9  ;;  %v75_v11 = vld [vmem:[%s2936_s1 + $0x20] sm:$0xff]  ;;  %v76_v20 = vld [vmem:[%s2936_s1 + $0x28] sm:$0xff]  ;;  %v77_v31 = vld [vmem:[%s2936_s1 + $0x30] sm:$0xff]  ;;  %s63_s17 = sadd.s32 1, %s2323_s17  }
  0xe0   : > { %v2421_v50 = vsub.f32 %v881_v34, %v2401_v40  ;;  %v2432_v53 = vsub.f32 %v884_v42, %v2409_v44  ;;  %v2434_v54 = vand.u32 4294901760, %v887_v46  ;;  %v2436_v55 = vand.u32 4294901760, %v89_v47  ;;  %v70_v57 = vld [vmem:[%s69_s12] sm:$0xff]  ;;  %v878_v21 = vld [vmem:[%s2937_s2 + $0x28] sm:$0xff]  ;;  %v879_v33 = vld [vmem:[%s2937_s2 + $0x30] sm:$0xff]  ;;  %p60_p0 = scmp.ge.s32.totalorder %s63_s17, 4  }
  0xe1   : > { %v890_v56 = vsel %vm78_vm1, %v876_v48, 0  ;;  %v168_v58 = vand.u32 4294901760, %v2418_v49  ;;  %v178_v60 = vand.u32 4294901760, %v2424_v51  ;;  %v2443_v61 = vsub.f32 %v86_v45, %v2426_v52  ;;  %v877_v12 = vld [vmem:[%s2937_s2 + $0x20] sm:$0xff]  ;;  %s2327_s27 = smov (%p60_p0), [#allocation2]  }
  0xe2   : > { %v969_v59 = vand.u32 4294901760, %v2421_v50  ;;  %v2445_v62 = vand.u32 4294901760, %v70_v57  ;;  %v979_v63 = vand.u32 4294901760, %v2432_v53  ;;  %v2449_v0 = vsub.f32 %v887_v46, %v2434_v54  ;;  %s1697_s28 = sshll.u32 (%p60_p0), %s2327_s27, 4  ;;  %s1698_s28 = int_to_ptr.vmem [resolvable:$true] %s1697_s28 }
  0xe3   : > { %v2452_v2 = vsub.f32 %v89_v47, %v2436_v55  ;;  %v169_v3 = vsub.f32 %v2418_v49, %v168_v58  ;;  %v179_v5 = vsub.f32 %v2424_v51, %v178_v60  ;;  %v188_v6 = vand.u32 4294901760, %v2443_v61  ;;  %s2285_s0 = scalar_lea.vmem (%p60_p0), %s1698_s28, 16  ;;  %s2289_s1 = scalar_lea.vmem (%p60_p0), %s1698_s28, 32 }
  0xe4   : > { %v970_v4 = vsub.f32 %v2421_v50, %v969_v59  ;;  %1815 = vmatpush3.msra.mxu0 %v2445_v62  ;;  %1953 = vmatpush3.msra.mxu1 %v2445_v62  ;;  %v980_v7 = vsub.f32 %v2432_v53, %v979_v63  ;;  %v2470_v8 = vsub.f32 %v70_v57, %v2445_v62  ;;  %v989_v9 = vand.u32 4294901760, %v2449_v0  ;;  %p2286_p1 = scmp.ne.s32.totalorder (%p60_p0), %s1698_s28, %s2285_s0  ;;  %p2290_p2 = scmp.lt.s32.totalorder (%p60_p0), %s1698_s28, %s1698_s28 }
  0xe5   : > { %v198_v10 = vand.u32 4294901760, %v2452_v2  ;;  %v170_v13 = vand.u32 4294901760, %v169_v3  ;;  %1837 = vmatprep.subr.mxu0 %v2325_v32  ;;  %v189_v15 = vsub.f32 %v2443_v61, %v188_v6  ;;  %1975 = vmatprep.subr.mxu1 %v2325_v32  ;;  %v180_v16 = vand.u32 4294901760, %v179_v5  ;;  %p2291_p3 = scmp.lt.s32.totalorder (%p60_p0), %s2289_s1, %s2285_s0 }
  0xe6   : > { %v971_v14 = vand.u32 4294901760, %v970_v4  ;;  %v981_v17 = vand.u32 4294901760, %v980_v7  ;;  %v2486_v18 = vand.u32 4294901760, %v2470_v8  ;;  %v990_v19 = vsub.f32 %v2449_v0, %v989_v9 }
  0xe7   : > { %1817 = vmatmul.mubr.f32.vlgmr.msra.gmra.mrb[0].mxu0 %v170_v13  ;;  %v199_v22 = vsub.f32 %v2452_v2, %v198_v10  ;;  %v2500_v23 = vand.u32 4294901760, %v890_v56  ;;  %v92_v24 = vsel %vm78_vm1, %v75_v11, 0  ;;  %v893_v25 = vsel %vm78_vm1, %v877_v12, 0  ;;  %p2292_p4 = por (%p60_p0), %p2291_p3, %p2290_p2 }
  0xe8   : > { %1955 = vmatmul.mubr.f32.vlgmr.msra.gmra.mrb[0].mxu1 %v971_v14  ;;  %1819 = vmatprep.mubr.msk.f32.mxu0 %vm2326_vm2, %v2325_v32  ;;  %v240_v26 = vsub.f32 %v2470_v8, %v2486_v18  ;;  %v190_v27 = vand.u32 4294901760, %v189_v15  ;;  %v991_v29 = vand.u32 4294901760, %v990_v19  ;;  %v2510_v30 = vand.u32 4294901760, %v92_v24 }
  0xe9   : > { %1957 = vmatprep.mubr.msk.f32.mxu1 %vm2326_vm2, %v2325_v32  ;;  %v2519_v34 = vsub.f32 %v890_v56, %v2500_v23  ;;  %v2521_v35 = vand.u32 4294901760, %v893_v25  ;;  %v95_v36 = vsel %vm78_vm1, %v76_v20, 0  ;;  %v896_v37 = vsel %vm78_vm1, %v878_v21, 0  ;;  %p2293_p5 = pnand (%p60_p0), %p2292_p4, %p2286_p1 }
  0xea   : > { %v241_v38 = vand.u32 4294901760, %v240_v26  ;;  %v2526_v42 = vsub.f32 %v92_v24, %v2510_v30  ;;  %v2528_v43 = vand.u32 4294901760, %v95_v36  ;;  %v2530_v45 = vand.u32 4294901760, %v896_v37 }
  0xeb   : > { %1820 = vmatmul.mubr.f32.gmra.mrb[2].mxu0 %v180_v16  ;;  %v999_v46 = vand.u32 4294901760, %v2519_v34  ;;  %v2534_v47 = vsub.f32 %v893_v25, %v2521_v35  ;;  %v98_v48 = vsel %vm78_vm1, %v77_v31, 0  ;;  %v899_v56 = vsel %vm78_vm1, %v879_v33, 0 }
  0xec   : > { %1958 = vmatmul.mubr.f32.gmra.mrb[2].mxu1 %v981_v17  ;;  %1838 = vmatpush3.msra.mxu0 %v241_v38  ;;  %v208_v57 = vand.u32 4294901760, %v2526_v42  ;;  %v2542_v3 = vsub.f32 %v95_v36, %v2528_v43  ;;  %v2545_v4 = vsub.f32 %v896_v37, %v2530_v45  ;;  %v2547_v5 = vand.u32 4294901760, %v98_v48 }
  0xed   : > { %1822 = vmatprep.mubr.msk.f32.mxu0 %vm2326_vm2, %v2325_v32  ;;  %1960 = vmatprep.mubr.msk.f32.mxu1 %vm2326_vm2, %v2325_v32  ;;  %v1000_v7 = vsub.f32 %v2519_v34, %v999_v46  ;;  %v1009_v11 = vand.u32 4294901760, %v2534_v47  ;;  %v2555_v12 = vand.u32 4294901760, %v899_v56  ;;  %v200_v13 = vand.u32 4294901760, %v199_v22 }
  0xee   : > { %1976 = vmatpush3.msra.mxu1 %v241_v38  ;;  %v209_v14 = vsub.f32 %v2526_v42, %v208_v57  ;;  %v218_v15 = vand.u32 4294901760, %v2542_v3  ;;  %v1019_v16 = vand.u32 4294901760, %v2545_v4  ;;  %1860 = vmatprep.subr.mxu0 %v2325_v32  ;;  %v2568_v20 = vsub.f32 %v98_v48, %v2547_v5 }
  0xef   : > { %1998 = vmatprep.subr.mxu1 %v2325_v32  ;;  %1823 = vmatmul.mubr.f32.gmra.mrb[4].mxu0 %v190_v27  ;;  %v1001_v17 = vand.u32 4294901760, %v1000_v7  ;;  %v1010_v19 = vsub.f32 %v2534_v47, %v1009_v11  ;;  %v2571_v21 = vsub.f32 %v899_v56, %v2555_v12 }
  0xf0   : > { %1961 = vmatmul.mubr.f32.gmra.mrb[4].mxu1 %v991_v29  ;;  %1825 = vmatprep.mubr.msk.f32.mxu0 %vm2326_vm2, %v2325_v32  ;;  %v210_v22 = vand.u32 4294901760, %v209_v14  ;;  %v219_v24 = vsub.f32 %v2542_v3, %v218_v15  ;;  %v1020_v26 = vsub.f32 %v2545_v4, %v1019_v16  ;;  %v228_v27 = vand.u32 4294901760, %v2568_v20 }
  0xf1   : > { %1963 = vmatprep.mubr.msk.f32.mxu1 %vm2326_vm2, %v2325_v32  ;;  %v1011_v25 = vand.u32 4294901760, %v1010_v19  ;;  %v1029_v29 = vand.u32 4294901760, %v2571_v21 }
  0xf2   : > { %v220_v31 = vand.u32 4294901760, %v219_v24  ;;  %v1021_v33 = vand.u32 4294901760, %v1020_v26  ;;  %v229_v36 = vsub.f32 %v2568_v20, %v228_v27 }
  0xf3   : > { %1826 = vmatmul.mubr.f32.gmra.mrb[6].mxu0 %v200_v13  ;;  %v1030_v37 = vsub.f32 %v2571_v21, %v1029_v29 }
  0xf4   : > { %1964 = vmatmul.mubr.f32.gmra.mrb[6].mxu1 %v1001_v17  ;;  %1828 = vmatprep.mubr.msk.f32.mxu0 %vm2326_vm2, %v2325_v32  ;;  %v230_v38 = vand.u32 4294901760, %v229_v36 }
  0xf5   : > { %1966 = vmatprep.mubr.msk.f32.mxu1 %vm2326_vm2, %v2325_v32  ;;  %v1031_v48 = vand.u32 4294901760, %v1030_v37 }
  0xf7   : > { %1829 = vmatmul.mubr.f32.gmra.mrb[8].mxu0 %v210_v22 }
  0xf8   : > { %1967 = vmatmul.mubr.f32.gmra.mrb[8].mxu1 %v1011_v25  ;;  %1831 = vmatprep.mubr.msk.f32.mxu0 %vm2326_vm2, %v2325_v32 }
  0xf9   : > { %1969 = vmatprep.mubr.msk.f32.mxu1 %vm2326_vm2, %v2325_v32 }
  0xfb   : > { %1832 = vmatmul.mubr.f32.gmra.mrb[10].mxu0 %v220_v31 }
  0xfc   : > { %1970 = vmatmul.mubr.f32.gmra.mrb[10].mxu1 %v1021_v33  ;;  %1834 = vmatprep.mubr.msk.f32.mxu0 %vm2326_vm2, %v2325_v32 }
  0xfd   : > { %1972 = vmatprep.mubr.msk.f32.mxu1 %vm2326_vm2, %v2325_v32 }
  0xff   : > { %1835 = vmatmul.mubr.f32.gmra.mrb[12].mxu0 %v230_v38 }
 0x100   : > { %1973 = vmatmul.mubr.f32.gmra.mrb[12].mxu1 %v1031_v48  ;;  %1839 = vmatprep.mubr.msk.f32.mxu0 %vm2326_vm2, %v2325_v32 }
 0x101   : > { %1977 = vmatprep.mubr.msk.f32.mxu1 %vm2326_vm2, %v2325_v32 }
 0x103   : > { %1840 = vmatmul.mubr.f32.vlgmr.msra.gmra.mrb[0].mxu0 %v2399_v39 }
 0x104   : > { %1978 = vmatmul.mubr.f32.vlgmr.msra.gmra.mrb[0].mxu1 %v2401_v40  ;;  %1842 = vmatprep.mubr.msk.f32.mxu0 %vm2326_vm2, %v2325_v32 }
 0x105   : > { %1980 = vmatprep.mubr.msk.f32.mxu1 %vm2326_vm2, %v2325_v32  ;;  %1861 = vmatpush3.msra.mxu0 %v2470_v8 }
 0x106   : > { %1999 = vmatpush3.msra.mxu1 %v2470_v8  ;;  %1883 = vmatprep.subr.mxu0 %v2325_v32 }
 0x107   : > { %2021 = vmatprep.subr.mxu1 %v2325_v32  ;;  %1843 = vmatmul.mubr.f32.gmra.mrb[2].mxu0 %v2403_v41 }
 0x108   : > { %1981 = vmatmul.mubr.f32.gmra.mrb[2].mxu1 %v2409_v44  ;;  %1845 = vmatprep.mubr.msk.f32.mxu0 %vm2326_vm2, %v2325_v32 }
 0x109   : > { %1983 = vmatprep.mubr.msk.f32.mxu1 %vm2326_vm2, %v2325_v32 }
 0x10b   : > { %1846 = vmatmul.mubr.f32.gmra.mrb[4].mxu0 %v2426_v52 }
 0x10c   : > { %1984 = vmatmul.mubr.f32.gmra.mrb[4].mxu1 %v2434_v54  ;;  %1848 = vmatprep.mubr.msk.f32.mxu0 %vm2326_vm2, %v2325_v32 }
 0x10d   : > { %1986 = vmatprep.mubr.msk.f32.mxu1 %vm2326_vm2, %v2325_v32 }
 0x10f   : > { %1849 = vmatmul.mubr.f32.gmra.mrb[6].mxu0 %v2436_v55 }
 0x110   : > { %1987 = vmatmul.mubr.f32.gmra.mrb[6].mxu1 %v2500_v23  ;;  %1851 = vmatprep.mubr.msk.f32.mxu0 %vm2326_vm2, %v2325_v32 }
 0x111   : > { %1989 = vmatprep.mubr.msk.f32.mxu1 %vm2326_vm2, %v2325_v32 }
 0x113   : > { %1852 = vmatmul.mubr.f32.gmra.mrb[8].mxu0 %v2510_v30 }
 0x114   : > { %1990 = vmatmul.mubr.f32.gmra.mrb[8].mxu1 %v2521_v35  ;;  %1854 = vmatprep.mubr.msk.f32.mxu0 %vm2326_vm2, %v2325_v32 }
 0x115   : > { %1992 = vmatprep.mubr.msk.f32.mxu1 %vm2326_vm2, %v2325_v32 }
 0x117   : > { %1855 = vmatmul.mubr.f32.gmra.mrb[10].mxu0 %v2528_v43 }
 0x118   : > { %1993 = vmatmul.mubr.f32.gmra.mrb[10].mxu1 %v2530_v45  ;;  %1857 = vmatprep.mubr.msk.f32.mxu0 %vm2326_vm2, %v2325_v32 }
 0x119   : > { %1995 = vmatprep.mubr.msk.f32.mxu1 %vm2326_vm2, %v2325_v32 }
 0x11b   : > { %1858 = vmatmul.mubr.f32.gmra.mrb[12].mxu0 %v2547_v5 }
 0x11c   : > { %1996 = vmatmul.mubr.f32.gmra.mrb[12].mxu1 %v2555_v12  ;;  %1862 = vmatprep.mubr.msk.f32.mxu0 %vm2326_vm2, %v2325_v32 }
 0x11d   : > { %2000 = vmatprep.mubr.msk.f32.mxu1 %vm2326_vm2, %v2325_v32 }
 0x11f   : > { %1863 = vmatmul.mubr.f32.vlgmr.msra.gmra.mrb[0].mxu0 %v2418_v49 }
 0x120   : > { %2001 = vmatmul.mubr.f32.vlgmr.msra.gmra.mrb[0].mxu1 %v2421_v50  ;;  %1865 = vmatprep.mubr.msk.f32.mxu0 %vm2326_vm2, %v2325_v32 }
 0x121   : > { %2003 = vmatprep.mubr.msk.f32.mxu1 %vm2326_vm2, %v2325_v32  ;;  %1884 = vmatpush3.msra.mxu0 %v2445_v62 }
 0x122   : > { %2022 = vmatpush3.msra.mxu1 %v2445_v62  ;;  %1906 = vmatprep.subr.mxu0 %v2325_v32 }
 0x123   : > { %2044 = vmatprep.subr.mxu1 %v2325_v32  ;;  %1866 = vmatmul.mubr.f32.gmra.mrb[2].mxu0 %v2424_v51 }
 0x124   : > { %2004 = vmatmul.mubr.f32.gmra.mrb[2].mxu1 %v2432_v53  ;;  %1868 = vmatprep.mubr.msk.f32.mxu0 %vm2326_vm2, %v2325_v32 }
 0x125   : > { %2006 = vmatprep.mubr.msk.f32.mxu1 %vm2326_vm2, %v2325_v32 }
 0x127   : > { %1869 = vmatmul.mubr.f32.gmra.mrb[4].mxu0 %v2443_v61 }
 0x128   : > { %2007 = vmatmul.mubr.f32.gmra.mrb[4].mxu1 %v2449_v0  ;;  %1871 = vmatprep.mubr.msk.f32.mxu0 %vm2326_vm2, %v2325_v32 }
 0x129   : > { %2009 = vmatprep.mubr.msk.f32.mxu1 %vm2326_vm2, %v2325_v32 }
 0x12b   : > { %1872 = vmatmul.mubr.f32.gmra.mrb[6].mxu0 %v2452_v2 }
 0x12c   : > { %2010 = vmatmul.mubr.f32.gmra.mrb[6].mxu1 %v2519_v34  ;;  %1874 = vmatprep.mubr.msk.f32.mxu0 %vm2326_vm2, %v2325_v32 }
 0x12d   : > { %2012 = vmatprep.mubr.msk.f32.mxu1 %vm2326_vm2, %v2325_v32 }
 0x12f   : > { %1875 = vmatmul.mubr.f32.gmra.mrb[8].mxu0 %v2526_v42 }
 0x130   : > { %2013 = vmatmul.mubr.f32.gmra.mrb[8].mxu1 %v2534_v47  ;;  %1877 = vmatprep.mubr.msk.f32.mxu0 %vm2326_vm2, %v2325_v32 }
 0x131   : > { %2015 = vmatprep.mubr.msk.f32.mxu1 %vm2326_vm2, %v2325_v32 }
 0x133   : > { %1878 = vmatmul.mubr.f32.gmra.mrb[10].mxu0 %v2542_v3 }
 0x134   : > { %2016 = vmatmul.mubr.f32.gmra.mrb[10].mxu1 %v2545_v4  ;;  %1880 = vmatprep.mubr.msk.f32.mxu0 %vm2326_vm2, %v2325_v32 }
 0x135   : > { %2018 = vmatprep.mubr.msk.f32.mxu1 %vm2326_vm2, %v2325_v32 }
 0x137   : > { %1881 = vmatmul.mubr.f32.gmra.mrb[12].mxu0 %v2568_v20 }
 0x138   : > { %2019 = vmatmul.mubr.f32.gmra.mrb[12].mxu1 %v2571_v21  ;;  %1885 = vmatprep.mubr.msk.f32.mxu0 %vm2326_vm2, %v2325_v32 }
 0x139   : > { %2023 = vmatprep.mubr.msk.f32.mxu1 %vm2326_vm2, %v2325_v32 }
 0x13b   : > { %1886 = vmatmul.mubr.f32.vlgmr.msra.gmra.mrb[0].mxu0 %v168_v58 }
 0x13c   : > { %2024 = vmatmul.mubr.f32.vlgmr.msra.gmra.mrb[0].mxu1 %v969_v59  ;;  %1888 = vmatprep.mubr.msk.f32.mxu0 %vm2326_vm2, %v2325_v32 }
 0x13d   : > { %2026 = vmatprep.mubr.msk.f32.mxu1 %vm2326_vm2, %v2325_v32  ;;  %1907 = vmatpush3.msra.mxu0 %v2486_v18 }
 0x13e   : > { %2045 = vmatpush3.msra.mxu1 %v2486_v18  ;;  %1929 = vmatprep.subr.mxu0 %v2325_v32 }
 0x13f   : > { %2067 = vmatprep.subr.mxu1 %v2325_v32  ;;  %1889 = vmatmul.mubr.f32.gmra.mrb[2].mxu0 %v178_v60 }
 0x140   : > { %2027 = vmatmul.mubr.f32.gmra.mrb[2].mxu1 %v979_v63  ;;  %1891 = vmatprep.mubr.msk.f32.mxu0 %vm2326_vm2, %v2325_v32 }
 0x141   : > { %2029 = vmatprep.mubr.msk.f32.mxu1 %vm2326_vm2, %v2325_v32 }
 0x143   : > { %1892 = vmatmul.mubr.f32.gmra.mrb[4].mxu0 %v188_v6 }
 0x144   : > { %2030 = vmatmul.mubr.f32.gmra.mrb[4].mxu1 %v989_v9  ;;  %1894 = vmatprep.mubr.msk.f32.mxu0 %vm2326_vm2, %v2325_v32 }
 0x145   : > { %2032 = vmatprep.mubr.msk.f32.mxu1 %vm2326_vm2, %v2325_v32 }
 0x147   : > { %1895 = vmatmul.mubr.f32.gmra.mrb[6].mxu0 %v198_v10 }
 0x148   : > { %2033 = vmatmul.mubr.f32.gmra.mrb[6].mxu1 %v999_v46  ;;  %1897 = vmatprep.mubr.msk.f32.mxu0 %vm2326_vm2, %v2325_v32 }
 0x149   : > { %2035 = vmatprep.mubr.msk.f32.mxu1 %vm2326_vm2, %v2325_v32 }
 0x14b   : > { %1898 = vmatmul.mubr.f32.gmra.mrb[8].mxu0 %v208_v57 }
 0x14c   : > { %2036 = vmatmul.mubr.f32.gmra.mrb[8].mxu1 %v1009_v11  ;;  %1900 = vmatprep.mubr.msk.f32.mxu0 %vm2326_vm2, %v2325_v32 }
 0x14d   : > { %2038 = vmatprep.mubr.msk.f32.mxu1 %vm2326_vm2, %v2325_v32 }
 0x14f   : > { %1901 = vmatmul.mubr.f32.gmra.mrb[10].mxu0 %v218_v15 }
 0x150   : > { %2039 = vmatmul.mubr.f32.gmra.mrb[10].mxu1 %v1019_v16  ;;  %1903 = vmatprep.mubr.msk.f32.mxu0 %vm2326_vm2, %v2325_v32 }
 0x151   : > { %2041 = vmatprep.mubr.msk.f32.mxu1 %vm2326_vm2, %v2325_v32 }
 0x153   : > { %1904 = vmatmul.mubr.f32.gmra.mrb[12].mxu0 %v228_v27 }
 0x154   : > { %2042 = vmatmul.mubr.f32.gmra.mrb[12].mxu1 %v1029_v29  ;;  %1908 = vmatprep.mubr.msk.f32.mxu0 %vm2326_vm2, %v2325_v32 }
 0x155   : > { %2046 = vmatprep.mubr.msk.f32.mxu1 %vm2326_vm2, %v2325_v32 }
 0x157   : > { %1909 = vmatmul.mubr.f32.vlgmr.msra.gmra.mrb[0].mxu0 %v2399_v39 }
 0x158   : > { %2047 = vmatmul.mubr.f32.vlgmr.msra.gmra.mrb[0].mxu1 %v2401_v40  ;;  %1911 = vmatprep.mubr.msk.f32.mxu0 %vm2326_vm2, %v2325_v32 }
 0x159   : > { %2049 = vmatprep.mubr.msk.f32.mxu1 %vm2326_vm2, %v2325_v32  ;;  %1930 = vmatpush3.msra.mxu0 %v2445_v62 }
 0x15a   : > { %2068 = vmatpush3.msra.mxu1 %v2445_v62 }
 0x15b   : > { %1912 = vmatmul.mubr.f32.gmra.mrb[2].mxu0 %v2403_v41 }
 0x15c   : > { %2050 = vmatmul.mubr.f32.gmra.mrb[2].mxu1 %v2409_v44  ;;  %1914 = vmatprep.mubr.msk.f32.mxu0 %vm2326_vm2, %v2325_v32 }
 0x15d   : > { %2052 = vmatprep.mubr.msk.f32.mxu1 %vm2326_vm2, %v2325_v32 }
 0x15f   : > { %1915 = vmatmul.mubr.f32.gmra.mrb[4].mxu0 %v2426_v52 }
 0x160   : > { %2053 = vmatmul.mubr.f32.gmra.mrb[4].mxu1 %v2434_v54  ;;  %1917 = vmatprep.mubr.msk.f32.mxu0 %vm2326_vm2, %v2325_v32 }
 0x161   : > { %2055 = vmatprep.mubr.msk.f32.mxu1 %vm2326_vm2, %v2325_v32 }
 0x163   : > { %1918 = vmatmul.mubr.f32.gmra.mrb[6].mxu0 %v2436_v55 }
 0x164   : > { %2056 = vmatmul.mubr.f32.gmra.mrb[6].mxu1 %v2500_v23  ;;  %1920 = vmatprep.mubr.msk.f32.mxu0 %vm2326_vm2, %v2325_v32 }
 0x165   : > { %2058 = vmatprep.mubr.msk.f32.mxu1 %vm2326_vm2, %v2325_v32 }
 0x167   : > { %1921 = vmatmul.mubr.f32.gmra.mrb[8].mxu0 %v2510_v30 }
 0x168   : > { %2059 = vmatmul.mubr.f32.gmra.mrb[8].mxu1 %v2521_v35  ;;  %1923 = vmatprep.mubr.msk.f32.mxu0 %vm2326_vm2, %v2325_v32 }
 0x169   : > { %2061 = vmatprep.mubr.msk.f32.mxu1 %vm2326_vm2, %v2325_v32 }
 0x16b   : > { %1924 = vmatmul.mubr.f32.gmra.mrb[10].mxu0 %v2528_v43 }
 0x16c   : > { %2062 = vmatmul.mubr.f32.gmra.mrb[10].mxu1 %v2530_v45  ;;  %1926 = vmatprep.mubr.msk.f32.mxu0 %vm2326_vm2, %v2325_v32 }
 0x16d   : > { %2064 = vmatprep.mubr.msk.f32.mxu1 %vm2326_vm2, %v2325_v32 }
 0x16f   : > { %1927 = vmatmul.mubr.f32.gmra.mrb[12].mxu0 %v2547_v5 }
 0x170   : > { %2065 = vmatmul.mubr.f32.gmra.mrb[12].mxu1 %v2555_v12  ;;  %1931 = vmatprep.mubr.msk.f32.mxu0 %vm2326_vm2, %v2325_v32 }
 0x171   : > { %2069 = vmatprep.mubr.msk.f32.mxu1 %vm2326_vm2, %v2325_v32 }
 0x173   : > { %1932 = vmatmul.mubr.f32.vlgmr.msra.gmra.mrb[0].mxu0 %v2399_v39 }
 0x174   : > { %2070 = vmatmul.mubr.f32.vlgmr.msra.gmra.mrb[0].mxu1 %v2401_v40  ;;  %1934 = vmatprep.mubr.msk.f32.mxu0 %vm2326_vm2, %v2325_v32 }
 0x175   : > { %2072 = vmatprep.mubr.msk.f32.mxu1 %vm2326_vm2, %v2325_v32 }
 0x177   : > { %1935 = vmatmul.mubr.f32.gmra.mrb[2].mxu0 %v2403_v41 }
 0x178   : > { %2073 = vmatmul.mubr.f32.gmra.mrb[2].mxu1 %v2409_v44  ;;  %1937 = vmatprep.mubr.msk.f32.mxu0 %vm2326_vm2, %v2325_v32 }
 0x179   : > { %2075 = vmatprep.mubr.msk.f32.mxu1 %vm2326_vm2, %v2325_v32 }
 0x17b   : > { %1938 = vmatmul.mubr.f32.gmra.mrb[4].mxu0 %v2426_v52 }
 0x17c   : > { %2076 = vmatmul.mubr.f32.gmra.mrb[4].mxu1 %v2434_v54  ;;  %1940 = vmatprep.mubr.msk.f32.mxu0 %vm2326_vm2, %v2325_v32 }
 0x17d   : > { %2078 = vmatprep.mubr.msk.f32.mxu1 %vm2326_vm2, %v2325_v32 }
 0x17f   : > { %1941 = vmatmul.mubr.f32.gmra.mrb[6].mxu0 %v2436_v55 }
 0x180   : > { %2079 = vmatmul.mubr.f32.gmra.mrb[6].mxu1 %v2500_v23  ;;  %1943 = vmatprep.mubr.msk.f32.mxu0 %vm2326_vm2, %v2325_v32 }
 0x181   : > { %2081 = vmatprep.mubr.msk.f32.mxu1 %vm2326_vm2, %v2325_v32 }
 0x183   : > { %1944 = vmatmul.mubr.f32.gmra.mrb[8].mxu0 %v2510_v30 }
 0x184   : > { %2082 = vmatmul.mubr.f32.gmra.mrb[8].mxu1 %v2521_v35  ;;  %1946 = vmatprep.mubr.msk.f32.mxu0 %vm2326_vm2, %v2325_v32 }
 0x185   : > { %2084 = vmatprep.mubr.msk.f32.mxu1 %vm2326_vm2, %v2325_v32 }
 0x187   : > { %1947 = vmatmul.mubr.f32.gmra.mrb[10].mxu0 %v2528_v43 }
 0x188   : > { %2085 = vmatmul.mubr.f32.gmra.mrb[10].mxu1 %v2530_v45  ;;  %1949 = vmatprep.mubr.msk.f32.mxu0 %vm2326_vm2, %v2325_v32 }
 0x189   : > { %2087 = vmatprep.mubr.msk.f32.mxu1 %vm2326_vm2, %v2325_v32 }
 0x18b   : > { %1950 = vmatmul.mubr.f32.gmra.mrb[12].mxu0 %v2547_v5 }
 0x18c   : > { %2088 = vmatmul.mubr.f32.gmra.mrb[12].mxu1 %v2555_v12 }
 0x246   : > { %v2841_v39 = vpop.f32.mrb[0].mxu0 }
 0x247   : > { %v2843_v40 = vpop.f32.mrb[0].mxu1  ;;  %v1933_v41 = vpop.f32.mrb[1].mxu0 }
 0x248   : > { %v2071_v44 = vpop.f32.mrb[1].mxu1 }
 0x24a   : > { %v2845_v49 = vpop.f32.mrb[2].mxu0 }
 0x24b   : > { %v2847_v50 = vpop.f32.mrb[2].mxu1  ;;  %v1936_v51 = vpop.f32.mrb[3].mxu0 }
 0x24c   : > { %v2074_v52 = vpop.f32.mrb[3].mxu1 }
 0x24e   : > { %v2849_v53 = vpop.f32.mrb[4].mxu0 }
 0x24f   : > { %v2851_v54 = vpop.f32.mrb[4].mxu1  ;;  %v1939_v32 = vpop.f32.mrb[5].mxu0 }
 0x250   : > { %v2077_v55 = vpop.f32.mrb[5].mxu1 }
 0x252   : > { %v2853_v58 = vpop.f32.mrb[6].mxu0 }
 0x253   : > { %v2855_v59 = vpop.f32.mrb[6].mxu1  ;;  %v1942_v60 = vpop.f32.mrb[7].mxu0 }
 0x254   : > { %v2080_v61 = vpop.f32.mrb[7].mxu1 }
 0x256   : > { %v2857_v62 = vpop.f32.mrb[8].mxu0 }
 0x257   : > { %v2859_v63 = vpop.f32.mrb[8].mxu1  ;;  %v804_v0 = vmax.f32 %v2841_v39, %v2857_v62  ;;  %v1945_v6 = vpop.f32.mrb[9].mxu0 }
 0x258   : > { %v1605_v2 = vmax.f32 %v2843_v40, %v2859_v63  ;;  %v2083_v8 = vpop.f32.mrb[9].mxu1 }
 0x25a   : > { %v2865_v9 = vpop.f32.mrb[10].mxu0 }
 0x25b   : > { %v2867_v10 = vpop.f32.mrb[10].mxu1  ;;  %v805_v18 = vmax.f32 %v2845_v49, %v2865_v9  ;;  %v1948_v30 = vpop.f32.mrb[11].mxu0 }
 0x25c   : > { %v1606_v23 = vmax.f32 %v2847_v50, %v2867_v10  ;;  %v2086_v34 = vpop.f32.mrb[11].mxu1 }
 0x25d   : > { %v807_v35 = vmax.f32 %v804_v0, %v805_v18 }
 0x25e   : > { %v1608_v42 = vmax.f32 %v1605_v2, %v1606_v23  ;;  %v2873_v43 = vpop.f32.mrb[12].mxu0 }
 0x25f   : > { %v2875_v45 = vpop.f32.mrb[12].mxu1  ;;  %v806_v46 = vmax.f32 %v2849_v53, %v2873_v43  ;;  %v1951_v56 = vpop.f32.mrb[13].mxu0 }
 0x260   : > { %v1607_v47 = vmax.f32 %v2851_v54, %v2875_v45  ;;  %v2089_v57 = vpop.f32.mrb[13].mxu1 }
 0x261   : > { %v808_v3 = vmax.f32 %v806_v46, %v2853_v58 }
 0x262   : > { %v1609_v4 = vmax.f32 %v1607_v47, %v2855_v59 }
 0x263   : > { %v809_v5 = vmax.f32 %v807_v35, %v808_v3 }
 0x264   : > { %v1610_v7 = vmax.f32 %v1608_v42, %v1609_v4 }
 0x265   : > { %v810_v11 = vrot.slane %v809_v5, 4 }
 0x266   : > { %v1611_v12 = vrot.slane %v1610_v7, 4 }
 0x267   : > { %v811_v13 = vmax.f32 %v809_v5, %v810_v11 }
 0x268   : > { %v1612_v14 = vmax.f32 %v1610_v7, %v1611_v12 }
 0x269   : > { %v812_v15 = vrot.slane %v811_v13, 2 }
 0x26a   : > { %v1613_v16 = vrot.slane %v1612_v14, 2 }
 0x26b   : > { %v813_v17 = vmax.f32 %v811_v13, %v812_v15 }
 0x26c   : > { %v1614_v19 = vmax.f32 %v1612_v14, %v1613_v16 }
 0x26d   : > { %v814_v20 = vrot.slane %v813_v17, 1 }
 0x26e   : > { %v1615_v21 = vrot.slane %v1614_v19, 1 }
 0x26f   : > { %v2883_v22 = vmax.f32 %v813_v17, %v814_v20 }
 0x270   : > { %v1616_v24 = vmax.f32 %v1614_v19, %v1615_v21 }
 0x271   : > { %v816_v25 = vsub.f32 %v2841_v39, %v2883_v22  ;;  %v817_v26 = vsub.f32 %v2845_v49, %v2883_v22  ;;  %v818_v27 = vsub.f32 %v2849_v53, %v2883_v22  ;;  %v819_v29 = vsub.f32 %v2853_v58, %v2883_v22 }
 0x272   : > { %v820_v31 = vsub.f32 %v2857_v62, %v2883_v22  ;;  %v821_v33 = vsub.f32 %v2865_v9, %v2883_v22  ;;  %v822_v36 = vsub.f32 %v2873_v43, %v2883_v22  ;;  %v1617_v37 = vsub.f32 %v2843_v40, %v1616_v24 }
 0x273   : > { %v823_v38 = vmul.f32 1.442695, %v816_v25  ;;  %v825_v48 = vmul.f32 1.442695, %v817_v26  ;;  %v1618_v41 = vsub.f32 %v2847_v50, %v1616_v24  ;;  %v827_v44 = vmul.f32 1.442695, %v818_v27 }
 0x274   : > { %v1619_v51 = vsub.f32 %v2851_v54, %v1616_v24  ;;  %v1620_v52 = vsub.f32 %v2855_v59, %v1616_v24  ;;  %v1621_v32 = vsub.f32 %v2859_v63, %v1616_v24  ;;  %v829_v55 = vmul.f32 1.442695, %v819_v29 }
 0x275   : > { %2253 = vpow2.f32 %v823_v38  ;;  %v1622_v60 = vsub.f32 %v2867_v10, %v1616_v24  ;;  %v1623_v61 = vsub.f32 %v2875_v45, %v1616_v24  ;;  %v831_v0 = vmul.f32 1.442695, %v820_v31 }
 0x276   : > { %2255 = vpow2.f32 %v825_v48  ;;  %v1624_v40 = vmul.f32 1.442695, %v1617_v37  ;;  %v1626_v2 = vmul.f32 1.442695, %v1618_v41  ;;  %v833_v50 = vmul.f32 1.442695, %v821_v33 }
 0x277   : > { %2257 = vpow2.f32 %v827_v44  ;;  %v1628_v6 = vmul.f32 1.442695, %v1619_v51  ;;  %v835_v54 = vmul.f32 1.442695, %v822_v36  ;;  %v1630_v59 = vmul.f32 1.442695, %v1620_v52 }
 0x278   : > { %2259 = vpow2.f32 %v829_v55  ;;  %v1632_v8 = vmul.f32 1.442695, %v1621_v32  ;;  %v1634_v23 = vmul.f32 1.442695, %v1622_v60  ;;  %v1636_v35 = vmul.f32 1.442695, %v1623_v61 }
 0x279   : > { %2261 = vpow2.f32 %v831_v0 }
 0x27a   : > { %2263 = vpow2.f32 %v1624_v40 }
 0x27b   : > { %2265 = vpow2.f32 %v1626_v2 }
 0x27c   : > { %2267 = vpow2.f32 %v833_v50 }
 0x27d   : > { %2269 = vpow2.f32 %v1628_v6 }
 0x27e   : > { %2271 = vpow2.f32 %v835_v54 }
 0x27f   : > { %v2254_v63 = vpop.eup %2253  ;;  %2273 = vpow2.f32 %v1630_v59 }
 0x280   : > { %v2256_v18 = vpop.eup %2255  ;;  %2275 = vpow2.f32 %v1632_v8 }
 0x281   : > { %v837_v10 = vadd.f32 %v2256_v18, %v2254_v63  ;;  %v2258_v30 = vpop.eup %2257  ;;  %2277 = vpow2.f32 %v1634_v23 }
 0x282   : > { %v2260_v42 = vpop.eup %2259  ;;  %2279 = vpow2.f32 %v1636_v35 }
 0x283   : > { %v838_v34 = vadd.f32 %v2258_v30, %v837_v10  ;;  %v2262_v45 = vpop.eup %2261 }
 0x284   : > { %v2264_v47 = vpop.eup %2263 }
 0x285   : > { %v839_v46 = vadd.f32 %v2260_v42, %v838_v34  ;;  %v2266_v56 = vpop.eup %2265 }
 0x286   : > { %v2268_v3 = vpop.eup %2267  ;;  %v1638_v4 = vadd.f32 %v2266_v56, %v2264_v47 }
 0x287   : > { %v840_v57 = vadd.f32 %v2262_v45, %v839_v46  ;;  %v2270_v5 = vpop.eup %2269 }
 0x288   : > { %v2272_v11 = vpop.eup %2271  ;;  %v1639_v12 = vadd.f32 %v2270_v5, %v1638_v4 }
 0x289   : > { %v841_v7 = vadd.f32 %v2268_v3, %v840_v57  ;;  %v2274_v13 = vpop.eup %2273 }
 0x28a   : > { %v1640_v15 = vadd.f32 %v2274_v13, %v1639_v12  ;;  %v2276_v16 = vpop.eup %2275 }
 0x28b   : > { %v842_v14 = vadd.f32 %v2272_v11, %v841_v7  ;;  %v2278_v20 = vpop.eup %2277 }
 0x28c   : > { %v1641_v19 = vadd.f32 %v2276_v16, %v1640_v15  ;;  %v2280_v25 = vpop.eup %2279 }
 0x28d   : > { %v843_v17 = vrot.slane %v842_v14, 4 }
 0x28e   : > { %v1642_v24 = vadd.f32 %v2278_v20, %v1641_v19 }
 0x28f   : > { %v844_v21 = vadd.f32 %v843_v17, %v842_v14 }
 0x290   : > { %v1643_v27 = vadd.f32 %v2280_v25, %v1642_v24 }
 0x291   : > { %v845_v26 = vrot.slane %v844_v21, 2 }
 0x292   : > { %v1644_v36 = vrot.slane %v1643_v27, 4 }
 0x293   : > { %v846_v29 = vadd.f32 %v845_v26, %v844_v21 }
 0x294   : > { %v1645_v48 = vadd.f32 %v1644_v36, %v1643_v27 }
 0x295   : > { %v847_v31 = vrot.slane %v846_v29, 1 }
 0x296   : > { %v1646_v0 = vrot.slane %v1645_v48, 2 }
 0x297   : > { %v848_v33 = vadd.f32 %v847_v31, %v846_v29  ;;  %v1688_v31 = vstv (%p60_p0), %s2359_s16 }
 0x298   : > { %v1647_v42 = vadd.f32 %v1646_v0, %v1645_v48 }
 0x299   : > { %2281 = vlog2.f32 %v848_v33 }
 0x29a   : > { %v1648_v57 = vrot.slane %v1647_v42, 1 }
 0x29c   : > { %v1649_v7 = vadd.f32 %v1648_v57, %v1647_v42 }
 0x29e   : > { %2283 = vrcp.f32 %v1649_v7 }
 0x2a3   : > { %v2282_v37 = vpop.eup %2281 }
 0x2a4   : > { %v850_v38 = vmul.f32 0.6931472, %v2282_v37 }
 0x2a6   : > { %v851_v41 = vadd.f32 %v850_v38, %v2883_v22 }
 0x2a8   : > { %v858_v44 = vsub.f32 %v2873_v43, %v851_v41  ;;  %v852_v51 = vsub.f32 %v2841_v39, %v851_v41  ;;  %v853_v52 = vsub.f32 %v2845_v49, %v851_v41  ;;  %v854_v32 = vsub.f32 %v2849_v53, %v851_v41 }
 0x2a9   : > { %v855_v55 = vsub.f32 %v2853_v58, %v851_v41  ;;  %v856_v60 = vsub.f32 %v2857_v62, %v851_v41  ;;  %v857_v61 = vsub.f32 %v2865_v9, %v851_v41 }
 0x2aa   : > { %v865_v40 = vmax.f32 %v858_v44, -6.9077554  ;;  %v859_v2 = vmax.f32 %v852_v51, -6.9077554  ;;  %v860_v50 = vmax.f32 %v853_v52, -6.9077554 }
 0x2ab   : > { %v861_v6 = vmax.f32 %v854_v32, -6.9077554  ;;  %v862_v22 = vmax.f32 %v855_v55, -6.9077554  ;;  %v863_v54 = vmax.f32 %v856_v60, -6.9077554 }
 0x2ac   : > { %v872_v43 = vmin.f32 %v865_v40, -0.0010005003  ;;  %v864_v59 = vmax.f32 %v857_v61, -6.9077554  ;;  %v866_v39 = vmin.f32 %v859_v2, -0.0010005003 }
 0x2ad   : > { %v867_v63 = vmin.f32 %v860_v50, -0.0010005003  ;;  %v868_v49 = vmin.f32 %v861_v6, -0.0010005003  ;;  %v869_v8 = vmin.f32 %v862_v22, -0.0010005003 }
 0x2ae   : > { %v870_v53 = vmin.f32 %v863_v54, -0.0010005003  ;;  %v871_v18 = vmin.f32 %v864_v59, -0.0010005003  ;;  %v1650_v58 = vmul.f32 %v2264_v47, %v866_v39  ;;  %v1656_v10 = vmul.f32 %v2280_v25, %v872_v43 }
 0x2af   : > { %v1651_v62 = vmul.f32 %v2266_v56, %v867_v63  ;;  %v1652_v23 = vmul.f32 %v2270_v5, %v868_v49  ;;  %v1653_v9 = vmul.f32 %v2274_v13, %v869_v8  ;;  %v2284_v5 = vpop.eup %2283 }
 0x2b0   : > { %v1654_v30 = vmul.f32 %v2276_v16, %v870_v53  ;;  %v1655_v34 = vmul.f32 %v2278_v20, %v871_v18 }
 0x2b1   : > { %v1657_v35 = vadd.f32 %v1651_v62, %v1650_v58 }
 0x2b3   : > { %v1658_v45 = vadd.f32 %v1657_v35, %v1652_v23 }
 0x2b5   : > { %v1659_v46 = vadd.f32 %v1658_v45, %v1653_v9 }
 0x2b7   : > { %v1660_v3 = vadd.f32 %v1659_v46, %v1654_v30 }
 0x2b9   : > { %v1661_v4 = vadd.f32 %v1660_v3, %v1655_v34 }
 0x2bb   : > { %v1662_v11 = vadd.f32 %v1661_v4, %v1656_v10 }
 0x2bd   : > { %v1663_v12 = vrot.slane %v1662_v11, 4 }
 0x2bf   : > { %v1664_v14 = vadd.f32 %v1663_v12, %v1662_v11 }
 0x2c1   : > { %v1665_v15 = vrot.slane %v1664_v14, 2 }
 0x2c3   : > { %v1666_v47 = vadd.f32 %v1665_v15, %v1664_v14 }
 0x2c5   : > { %v1667_v17 = vrot.slane %v1666_v47, 1 }
 0x2c7   : > { %v1668_v56 = vadd.f32 %v1667_v17, %v1666_v47  ;;  %62 = sbr.rel (!%p60_p0) target bundleno = 219 (0xdb), region = 41 }
 0x2c9   : > { %v1670_v13 = vmul.f32 %v2284_v5, %v1668_v56 }
 0x2cb   : > { %v1671_v16 = vsub.f32 %v2319_v28, %v1670_v13  }
 0x2cd   : > { %v2939_v28 = vmov %v1671_v16  ;;  %v1672_v19 = vsel (%p60_p0), %vm41_vm0, %v1671_v16, 0.0 }
 0x2ce   :  { %1673 = vadd.xlane.f32.xlu0 %v1672_v19  ;;  %v1683_v28 = vand.u32 127, %v21_v1 }
 0x2d0   :  { %vm1685_vm3 = vcmp.eq.s32.totalorder %v1683_v28, 1  ;;  %vm1684_vm4 = vcmp.eq.s32.totalorder %v1683_v28, 0 }
 0x35b   :  { %v1674_v20 = vpop.xlane.xlu0 %1673 }
 0x35c   :  { %v1675_v21 = vrot.slane %v1674_v20, 4 }
 0x35e   :  { %v1676_v24 = vadd.f32 %v1675_v21, %v1674_v20 }
 0x360   :  { %v1677_v25 = vrot.slane %v1676_v24, 2 }
 0x362   :  { %v1678_v26 = vadd.f32 %v1677_v25, %v1676_v24 }
 0x364   :  { %v1679_v27 = vrot.slane %v1678_v26, 1 }
 0x366   :  { %v1680_v29 = vadd.f32 %v1679_v27, %v1678_v26 }
 0x368   :  { %2232 = vpush %v1680_v29 }
 0x399   :  { %s2233_s29 = spop %2232 }
 0x39a   :  { %v1686_v33 = vstv %s2233_s29 }
 0x39b   :  { %v1687_v36 = vsel %vm1685_vm3, %v1686_v33, 0.0 }
 0x39c   :  { %v1689_v37 = vsel %vm1684_vm4, %v1688_v31, %v1687_v36 }
 0x39d   :  { %1690 = vst [vmem:[#allocation2] sm:$0x1] %v1689_v37 }
 0x39e   :  { %2296 = shalt.err (!%p2293_p5)
}
 0x39f   :  { %s2297_s30 = scalar_lea.hbm %s2938_s3, 16 }
 0x3a0   :  { %p2298_p6 = scmp.ne.s32.totalorder %s2938_s3, %s2297_s30  ;;  %p2301_p7 = scmp.lt.u32.totalorder %s2297_s30, %s2938_s3 }
 0x3a2   :  { %p2303_p8 = pnand %p2301_p7, %p2298_p6 }
 0x3a4   :  { %2306 = shalt.err (!%p2303_p8)
}
 0x3a5   :  { %1700 = dma.vmem_to_hbm [thread:$0]  %s1698_s28, 16, %s2938_s3, [#allocation3]  }
 0x3a6   :  { %2315 = dma.done.wait [#allocation3], 16  }
 0x3a7   :  { %2316 = vsyncadd [#allocation3], 4294967280 }
 0x3a8   :  { %1704 = vsyncpa [#allocation3], 1 }

</bundles_post_ra>
